<compile_context>
chip_gen: v7x
topology: tpu7x:2x2x1
jax: 0.10.0
libtpu: 0.0.40
codegen_flags: <defaults>
</compile_context>

<pallas_src>
import jax
import jax.numpy as jnp
from jax.experimental import pallas as pl
from jax.experimental.pallas import tpu as pltpu


def _round_up(x, m):
    return ((x + m - 1) // m) * m


# ---------------------------------------------------------------------------
# Pallas kernel: fused logits (+bias, +softcap) and running argmax over vocab
# ---------------------------------------------------------------------------
def _make_sampler_logits_kernel(softcap, has_bias, vocab_size, tiles_per_split):
    def kernel(*refs):
        if has_bias:
            (hidden_ref, emb_ref, bias_ref,
             logits_ref, argmax_ref, maxv_out_ref, maxv_sc, maxi_sc) = refs
        else:
            (hidden_ref, emb_ref,
             logits_ref, argmax_ref, maxv_out_ref, maxv_sc, maxi_sc) = refs
            bias_ref = None

        s = pl.program_id(0)          # vocab split (parallel across TCs)
        j = pl.program_id(1)          # vocab tile within split (sequential)
        tv = logits_ref.shape[-1]

        @pl.when(j == 0)
        def _init():
            maxv_sc[...] = jnp.full(maxv_sc.shape, -jnp.inf, maxv_sc.dtype)
            maxi_sc[...] = jnp.zeros(maxi_sc.shape, maxi_sc.dtype)

        # (B, H) x (TV, H) -> (B, TV): MXU matmul with f32 accumulation,
        # contracting the hidden dim of both operands (transposed RHS path).
        logits = jax.lax.dot_general(
            hidden_ref[...], emb_ref[...],
            dimension_numbers=(((1,), (1,)), ((), ())),
            preferred_element_type=jnp.float32)

        if bias_ref is not None:
            logits = logits + bias_ref[...].astype(jnp.float32)

        if softcap is not None:
            inv_cap = 1.0 / float(softcap)
            logits = jnp.tanh(logits * inv_cap) * float(softcap)   # EUP tanh

        logits_ref[...] = logits.astype(logits_ref.dtype)

        # Running argmax across vocab tiles (first-max-wins tie breaking),
        # masking padded vocab lanes (>= vocab_size) to -inf.
        tile_start = (s * tiles_per_split + j) * tv
        lane_ids = (jax.lax.broadcasted_iota(jnp.int32, logits.shape, 1)
                    + tile_start)
        masked = jnp.where(lane_ids < vocab_size, logits, -jnp.inf)
        tile_max = jnp.max(masked, axis=-1, keepdims=True)          # (B, 1)
        big = jnp.iinfo(jnp.int32).max
        tile_arg = jnp.min(
            jnp.where(masked == tile_max, lane_ids, big),
            axis=-1, keepdims=True)                                  # (B, 1)

        better = tile_max > maxv_sc[...]
        maxi_sc[...] = jnp.where(better, tile_arg, maxi_sc[...])
        maxv_sc[...] = jnp.where(better, tile_max, maxv_sc[...])

        @pl.when(j == pl.num_programs(1) - 1)
        def _finalize():
            argmax_ref[0] = maxi_sc[...]
            maxv_out_ref[0] = maxv_sc[...]

    return kernel


def sampler_logits_argmax(hidden, embedding, embedding_bias=None, *,
                          softcap=None, vocab_tile=None, vocab_splits=2,
                          vmem_budget_bytes=40 * 1024 * 1024):
    """logits = hidden @ embedding.T (+bias, +softcap); plus argmax over vocab.

    hidden:    (B, H) float
    embedding: (V, H) float (pass bf16 for production streaming)
    embedding_bias: optional (V,) float
    Returns (logits (B, V) f32, argmax_ids (B,) int32).
    """
    B, H = hidden.shape
    V, He = embedding.shape
    assert He == H, "hidden dim mismatch"

    emb_bytes = jnp.dtype(embedding.dtype).itemsize
    hid_bytes = jnp.dtype(hidden.dtype).itemsize

    # Pad batch to a full sublane (8) so (B, tv) stores are unmasked vst.
    B_pad = _round_up(max(B, 1), 8)
    if B_pad != B:
        hidden = jnp.pad(hidden, ((0, B_pad - B), (0, 0)))

    V128 = _round_up(V, 128)

    def _vmem_need(tv):
        return (2 * tv * H * emb_bytes          # embedding tile, double-buffered
                + 2 * B_pad * tv * 4            # logits output tile, dbl-buffered
                + 2 * B_pad * H * hid_bytes     # hidden block
                + 2 * tv * 4                    # bias tile
                + 8 * B_pad * 4)                # argmax/max outputs + scratch

    # Pick the largest lane-dense vocab tile that fits the VMEM budget.
    candidates = ([vocab_tile] if vocab_tile else []) + [4096, 2048, 1024, 512, 256, 128]
    tv = 128
    for cand in candidates:
        if cand is None or cand % 128 != 0:
            continue
        cand = min(cand, V128)
        if _vmem_need(cand) <= vmem_budget_bytes:
            tv = cand
            break

    num_splits = int(vocab_splits) if V128 > tv else 1
    num_splits = max(1, min(num_splits, max(1, V128 // tv)))
    Vpad = _round_up(V, tv * num_splits)
    tiles_per_split = Vpad // (tv * num_splits)

    if Vpad != V:
        # TODO(synk): in production pad the embedding/bias once at weight-load
        # time instead of per call (this is a full HBM copy of the table).
        embedding = jnp.pad(embedding, ((0, Vpad - V), (0, 0)))
        if embedding_bias is not None:
            embedding_bias = jnp.pad(embedding_bias, (0, Vpad - V))

    has_bias = embedding_bias is not None
    in_specs = [
        pl.BlockSpec((B_pad, H), lambda s, j: (0, 0)),                      # hidden
        pl.BlockSpec((tv, H), lambda s, j: (s * tiles_per_split + j, 0)),   # emb tile
    ]
    inputs = [hidden, embedding]
    if has_bias:
        in_specs.append(
            pl.BlockSpec((1, tv), lambda s, j: (0, s * tiles_per_split + j)))
        inputs.append(embedding_bias.reshape(1, Vpad))

    kernel = _make_sampler_logits_kernel(softcap, has_bias, V, tiles_per_split)

    vmem_limit = min(max(int(1.3 * _vmem_need(tv)) + (2 << 20), 32 << 20),
                     64 << 20)

    cost = pl.CostEstimate(
        flops=2 * B_pad * H * Vpad,
        transcendentals=(B_pad * Vpad if softcap is not None else 0),
        bytes_accessed=(Vpad * H * emb_bytes + B_pad * Vpad * 4
                        + B_pad * H * hid_bytes
                        + (Vpad * 4 if has_bias else 0)))

    logits, argmax, maxv = pl.pallas_call(
        kernel,
        out_shape=(jax.ShapeDtypeStruct((B_pad, Vpad), jnp.float32),
                   jax.ShapeDtypeStruct((num_splits, B_pad, 1), jnp.int32),
                   jax.ShapeDtypeStruct((num_splits, B_pad, 1), jnp.float32)),
        grid_spec=pltpu.PrefetchScalarGridSpec(
            num_scalar_prefetch=0,
            grid=(num_splits, tiles_per_split),
            in_specs=in_specs,
            out_specs=[
                pl.BlockSpec((B_pad, tv),
                             lambda s, j: (0, s * tiles_per_split + j)),
                pl.BlockSpec((1, B_pad, 1), lambda s, j: (s, 0, 0)),
                pl.BlockSpec((1, B_pad, 1), lambda s, j: (s, 0, 0)),
            ],
            scratch_shapes=[pltpu.VMEM((B_pad, 1), jnp.float32),
                            pltpu.VMEM((B_pad, 1), jnp.int32)],
        ),
        compiler_params=pltpu.CompilerParams(
            dimension_semantics=("parallel", "arbitrary"),
            vmem_limit_bytes=vmem_limit),
        cost_estimate=cost,
    )(*inputs)

    # Combine per-split running maxima.  Ties resolve to the lower split index
    # (lower vocab id), matching argmax first-occurrence semantics.
    maxv = maxv[:, :B, 0]                              # (S, B)
    maxi = argmax[:, :B, 0]                            # (S, B)
    best = jnp.argmax(maxv, axis=0)                    # (B,)
    argmax_ids = jnp.take_along_axis(maxi, best[None, :], axis=0)[0]
    return logits[:B, :V], argmax_ids.astype(jnp.int32)


# ---------------------------------------------------------------------------
# Full Sampler.forward equivalent
# ---------------------------------------------------------------------------
def sampler_forward(embedding, hidden_states, output_positions, temperatures,
                    top_ps, top_ks, embedding_bias=None, *,
                    final_logit_softcapping=None, key=None,
                    vocab_tile=None, vocab_splits=2, sample_topk_cap=1024):
    """JAX/Pallas equivalent of Sampler.forward.

    embedding:        (V, H)
    hidden_states:    (B, S, H)
    output_positions: (P,) int (P == 1 for the usual decode step)
    temperatures:     (B,) or None
    top_ps, top_ks:   (B,)
    Returns (next_token_ids (B,), logits (B, V)).
    """
    hidden = jnp.take(hidden_states, output_positions, axis=1)
    if hidden.shape[1] == 1:                       # matches .squeeze(dim=1)
        hidden = jnp.squeeze(hidden, axis=1)

    logits, argmax_ids = sampler_logits_argmax(
        hidden, embedding, embedding_bias,
        softcap=final_logit_softcapping,
        vocab_tile=vocab_tile, vocab_splits=vocab_splits)

    if temperatures is None:
        return argmax_ids, logits

    logits = logits / temperatures[:, None].astype(jnp.float32)
    probs = jax.nn.softmax(logits, axis=-1)
    V = probs.shape[-1]

    # TODO(synk): the sort/cumsum/multinomial tail has no clean Pallas TPU
    # equivalent; it runs in plain JAX on a lax.top_k slice (exact as long as
    # the top-p mass and all top_ks fall within K, true for practical configs).
    K = int(min(V, max(int(sample_topk_cap), 128)))
    probs_sort, probs_idx = jax.lax.top_k(probs, K)          # descending
    probs_sum = jnp.cumsum(probs_sort, axis=-1)
    topp_mask = (probs_sum - probs_sort) > top_ps[:, None]
    probs_sort = jnp.where(topp_mask, 0.0, probs_sort)
    topk_mask = jnp.arange(K, dtype=jnp.int32)[None, :] >= top_ks[:, None]
    probs_sort = jnp.where(topk_mask, 0.0, probs_sort)
    probs_sort = probs_sort / jnp.sum(probs_sort, axis=-1, keepdims=True)

    if key is None:
        key = jax.random.PRNGKey(0)
    slot = jax.random.categorical(key, jnp.log(probs_sort), axis=-1)  # (B,)
    next_ids = jnp.take_along_axis(probs_idx, slot[:, None], axis=-1)[:, 0]
    return next_ids.astype(jnp.int32), logits


# ---------------------------------------------------------------------------
# Pure-JAX reference (mirrors the PyTorch code path)
# ---------------------------------------------------------------------------
def _ref_logits(embedding, hidden_states, output_positions, embedding_bias,
                softcap):
    hidden = jnp.squeeze(jnp.take(hidden_states, output_positions, axis=1),
                         axis=1)
    logits = hidden @ embedding.T
    if embedding_bias is not None:
        logits = logits + embedding_bias
    if softcap is not None:
        logits = jnp.tanh(logits / softcap) * softcap
    return logits.astype(jnp.float32)


if __name__ == "__main__":
    key = jax.random.PRNGKey(0)
    k_emb, k_hid, k_bias, k_sample = jax.random.split(key, 4)

    B, S, H, V = 2, 8, 32, 512          # small shapes; V multiple of 128
    SOFTCAP = 30.0

    embedding = jax.random.normal(k_emb, (V, H), dtype=jnp.float32)
    hidden_states = jax.random.normal(k_hid, (B, S, H), dtype=jnp.float32)
    embedding_bias = 0.1 * jax.random.normal(k_bias, (V,), dtype=jnp.float32)
    output_positions = jnp.array([S - 1], dtype=jnp.int32)

    temperatures = jnp.array([0.8, 1.2], dtype=jnp.float32)
    top_ps = jnp.array([0.9, 0.95], dtype=jnp.float32)
    top_ks = jnp.array([4, 8], dtype=jnp.int32)

    # ---- Path 1: greedy (temperatures=None), no bias ----
    ids_g, logits_g = sampler_forward(
        embedding, hidden_states, output_positions, None, top_ps, top_ks,
        embedding_bias=None, final_logit_softcapping=SOFTCAP)
    ids_g, logits_g = jax.block_until_ready((ids_g, logits_g))

    ref_lg = _ref_logits(embedding, hidden_states, output_positions, None,
                         SOFTCAP)
    assert logits_g.shape == (B, V) and logits_g.dtype == jnp.float32
    assert jnp.allclose(logits_g, ref_lg, atol=1e-4, rtol=1e-4)
    assert ids_g.shape == (B,)
    assert jnp.array_equal(ids_g, jnp.argmax(ref_lg, axis=-1).astype(jnp.int32))

    # ---- Path 1b: non-divisible vocab (padding + masking) and 2 vocab splits ----
    V2 = 500
    emb2 = embedding[:V2]
    bias2 = embedding_bias[:V2]
    ids_p, logits_p = sampler_forward(
        emb2, hidden_states, output_positions, None, top_ps, top_ks,
        embedding_bias=bias2, final_logit_softcapping=SOFTCAP,
        vocab_tile=128, vocab_splits=2)
    ids_p, logits_p = jax.block_until_ready((ids_p, logits_p))

    ref_lp = _ref_logits(emb2, hidden_states, output_positions, bias2, SOFTCAP)
    assert logits_p.shape == (B, V2)
    assert jnp.allclose(logits_p, ref_lp, atol=1e-4, rtol=1e-4)
    assert jnp.array_equal(ids_p, jnp.argmax(ref_lp, axis=-1).astype(jnp.int32))

    # ---- Path 2: temperature + top-p/top-k sampling, with bias ----
    ids_s, logits_s = sampler_forward(
        embedding, hidden_states, output_positions, temperatures, top_ps,
        top_ks, embedding_bias=embedding_bias,
        final_logit_softcapping=SOFTCAP, key=k_sample)
    ids_s, logits_s = jax.block_until_ready((ids_s, logits_s))

    ref_ls = _ref_logits(embedding, hidden_states, output_positions,
                         embedding_bias, SOFTCAP) / temperatures[:, None]
    assert logits_s.shape == (B, V)
    assert jnp.allclose(logits_s, ref_ls, atol=1e-4, rtol=1e-4)
    assert ids_s.shape == (B,)
    assert bool(jnp.all((ids_s >= 0) & (ids_s < V)))

    # Sampled ids must lie in the top-p/top-k-filtered support.
    ref_probs = jax.nn.softmax(ref_ls, axis=-1)
    order = jnp.argsort(-ref_probs, axis=-1)
    ps = jnp.take_along_axis(ref_probs, order, axis=-1)
    csum = jnp.cumsum(ps, axis=-1)
    ps = jnp.where((csum - ps) > top_ps[:, None], 0.0, ps)
    ps = jnp.where(jnp.arange(V)[None, :] >= top_ks[:, None], 0.0, ps)
    support = jnp.take_along_axis(ps, jnp.argsort(order, axis=-1), axis=-1) > 0
    assert bool(jnp.all(support[jnp.arange(B), ids_s]))

    print("KERNEL_OK")
</pallas_src>

<mosaic_0001>
module attributes {stable_mosaic.version = 11 : i64} {
  func.func @kernel(%arg0: i32, %arg1: i32, %arg2: memref<8x32xf32, #tpu.memory_space<vmem>>, %arg3: memref<512x32xf32, #tpu.memory_space<vmem>>, %arg4: memref<8x512xf32, #tpu.memory_space<vmem>>, %arg5: memref<1x8x1xi32, #tpu.memory_space<vmem>>, %arg6: memref<1x8x1xf32, #tpu.memory_space<vmem>>, %arg7: memref<8x1xf32, #tpu.memory_space<vmem>>, %arg8: memref<8x1xi32, #tpu.memory_space<vmem>>) attributes {dimension_semantics = [#tpu.dimension_semantics<parallel>, #tpu.dimension_semantics<arbitrary>], iteration_bounds = array<i64: 1, 1>, scalar_prefetch = 0 : i64, scratch_operands = 2 : i64, tpu.core_type = #tpu.core_type<tc>, window_params = [{pipeline_mode = #tpu.pipeline_mode<synchronous>, transform_indices = @transform_0, window_bounds = array<i64: 8, 32>}, {transform_indices = @transform_1, window_bounds = array<i64: 512, 32>}, {transform_indices = @transform_2, window_bounds = array<i64: 8, 512>}, {transform_indices = @transform_3, window_bounds = array<i64: 1, 8, 1>}, {transform_indices = @transform_4, window_bounds = array<i64: 1, 8, 1>}]} {
    %c0_i32 = arith.constant 0 : i32
    %0 = arith.cmpi eq, %arg1, %c0_i32 : i32
    %1 = arith.extui %0 : i1 to i32
    %c0_i32_0 = arith.constant 0 : i32
    %2 = arith.cmpi ne, %1, %c0_i32_0 : i32
    scf.if %2 {
      %cst_24 = arith.constant 0xFF800000 : f32
      %41 = vector.broadcast %cst_24 : f32 to vector<8x1xf32>
      %c0_25 = arith.constant 0 : index
      %c0_26 = arith.constant 0 : index
      %42 = vector.load %arg7[%c0_25, %c0_26] : memref<8x1xf32, #tpu.memory_space<vmem>>, vector<8x1xf32>
      tpu.vector_store %arg7[%c0_25, %c0_26], %41 {strides = array<i32>} : memref<8x1xf32, #tpu.memory_space<vmem>>, vector<8x1xf32>,
      %c0_i32_27 = arith.constant 0 : i32
      %43 = vector.broadcast %c0_i32_27 : i32 to vector<8x1xi32>
      %c0_28 = arith.constant 0 : index
      %c0_29 = arith.constant 0 : index
      %44 = vector.load %arg8[%c0_28, %c0_29] : memref<8x1xi32, #tpu.memory_space<vmem>>, vector<8x1xi32>
      tpu.vector_store %arg8[%c0_28, %c0_29], %43 {strides = array<i32>} : memref<8x1xi32, #tpu.memory_space<vmem>>, vector<8x1xi32>,
    } else {
    }
    %c0 = arith.constant 0 : index
    %c0_1 = arith.constant 0 : index
    %3 = vector.load %arg2[%c0, %c0_1] : memref<8x32xf32, #tpu.memory_space<vmem>>, vector<8x32xf32>
    %c0_2 = arith.constant 0 : index
    %c0_3 = arith.constant 0 : index
    %4 = vector.load %arg3[%c0_2, %c0_3] : memref<512x32xf32, #tpu.memory_space<vmem>>, vector<512x32xf32>
    %cst = arith.constant dense<0.000000e+00> : vector<8x512xf32>
    %5 = tpu.matmul %3, %4, %cst {dimension_numbers = #tpu.dot_dimension_numbers<[1], [1], [0], [0], [0, 0, 1, 0], [], []>} : vector<8x32xf32>, vector<512x32xf32>, vector<8x512xf32> -> vector<8x512xf32>
    %cst_4 = arith.constant 0.0333333351 : f32
    %6 = vector.broadcast %cst_4 : f32 to vector<8x512xf32>
    %7 = arith.mulf %5, %6 : vector<8x512xf32>
    %8 = math.tanh %7 : vector<8x512xf32>
    %cst_5 = arith.constant 3.000000e+01 : f32
    %9 = vector.broadcast %cst_5 : f32 to vector<8x512xf32>
    %10 = arith.mulf %8, %9 : vector<8x512xf32>
    %c0_6 = arith.constant 0 : index
    %c0_7 = arith.constant 0 : index
    %11 = vector.load %arg4[%c0_6, %c0_7] : memref<8x512xf32, #tpu.memory_space<vmem>>, vector<8x512xf32>
    tpu.vector_store %arg4[%c0_6, %c0_7], %10 {strides = array<i32>} : memref<8x512xf32, #tpu.memory_space<vmem>>, vector<8x512xf32>,
    %c1_i32 = arith.constant 1 : i32
    %12 = arith.muli %arg0, %c1_i32 : i32
    %13 = arith.addi %12, %arg1 : i32
    %c512_i32 = arith.constant 512 : i32
    %14 = arith.muli %13, %c512_i32 : i32
    %15 = tpu.iota {dimensions = array<i32: 1>} : vector<8x512xi32>
    %16 = vector.broadcast %14 : i32 to vector<8x512xi32>
    %17 = arith.addi %15, %16 : vector<8x512xi32>
    %c512_i32_8 = arith.constant 512 : i32
    %18 = vector.broadcast %c512_i32_8 : i32 to vector<8x512xi32>
    %19 = arith.cmpi slt, %17, %18 : vector<8x512xi32>
    %cst_9 = arith.constant 0xFF800000 : f32
    %20 = vector.broadcast %cst_9 : f32 to vector<8x512xf32>
    %21 = arith.select %19, %10, %20 : vector<8x512xi1>, vector<8x512xf32>
    %cst_10 = arith.constant dense<0xFF800000> : vector<8xf32>
    %22 = vector.multi_reduction <maximumf>, %21, %cst_10 [1] : vector<8x512xf32> to vector<8xf32>
    %23 = vector.shape_cast %22 : vector<8xf32> to vector<8x1xf32>
    %24 = vector.broadcast %23 : vector<8x1xf32> to vector<8x512xf32>
    %25 = arith.cmpf oeq, %21, %24 : vector<8x512xf32>
    %c2147483647_i32 = arith.constant 2147483647 : i32
    %26 = vector.broadcast %c2147483647_i32 : i32 to vector<8x512xi32>
    %27 = arith.select %25, %17, %26 : vector<8x512xi1>, vector<8x512xi32>
    %cst_11 = arith.constant dense<2147483647> : vector<8xi32>
    %28 = vector.multi_reduction <minsi>, %27, %cst_11 [1] : vector<8x512xi32> to vector<8xi32>
    %29 = vector.shape_cast %28 : vector<8xi32> to vector<8x1xi32>
    %c0_12 = arith.constant 0 : index
    %c0_13 = arith.constant 0 : index
    %30 = vector.load %arg7[%c0_12, %c0_13] : memref<8x1xf32, #tpu.memory_space<vmem>>, vector<8x1xf32>
    %31 = arith.cmpf ogt, %23, %30 : vector<8x1xf32>
    %c0_14 = arith.constant 0 : index
    %c0_15 = arith.constant 0 : index
    %32 = vector.load %arg8[%c0_14, %c0_15] : memref<8x1xi32, #tpu.memory_space<vmem>>, vector<8x1xi32>
    %33 = arith.select %31, %29, %32 : vector<8x1xi1>, vector<8x1xi32>
    %c0_16 = arith.constant 0 : index
    %c0_17 = arith.constant 0 : index
    %34 = vector.load %arg8[%c0_16, %c0_17] : memref<8x1xi32, #tpu.memory_space<vmem>>, vector<8x1xi32>
    tpu.vector_store %arg8[%c0_16, %c0_17], %33 {strides = array<i32>} : memref<8x1xi32, #tpu.memory_space<vmem>>, vector<8x1xi32>,
    %c0_18 = arith.constant 0 : index
    %c0_19 = arith.constant 0 : index
    %35 = vector.load %arg7[%c0_18, %c0_19] : memref<8x1xf32, #tpu.memory_space<vmem>>, vector<8x1xf32>
    %36 = arith.select %31, %23, %35 : vector<8x1xi1>, vector<8x1xf32>
    %c0_20 = arith.constant 0 : index
    %c0_21 = arith.constant 0 : index
    %37 = vector.load %arg7[%c0_20, %c0_21] : memref<8x1xf32, #tpu.memory_space<vmem>>, vector<8x1xf32>
    tpu.vector_store %arg7[%c0_20, %c0_21], %36 {strides = array<i32>} : memref<8x1xf32, #tpu.memory_space<vmem>>, vector<8x1xf32>,
    %c0_i32_22 = arith.constant 0 : i32
    %38 = arith.cmpi eq, %arg1, %c0_i32_22 : i32
    %39 = arith.extui %38 : i1 to i32
    %c0_i32_23 = arith.constant 0 : i32
    %40 = arith.cmpi ne, %39, %c0_i32_23 : i32
    scf.if %40 {
      %c0_24 = arith.constant 0 : index
      %c0_25 = arith.constant 0 : index
      %41 = vector.load %arg8[%c0_24, %c0_25] : memref<8x1xi32, #tpu.memory_space<vmem>>, vector<8x1xi32>
      %c0_26 = arith.constant 0 : index
      %c0_27 = arith.constant 0 : index
      %c0_28 = arith.constant 0 : index
      %42 = vector.load %arg5[%c0_26, %c0_27, %c0_28] : memref<1x8x1xi32, #tpu.memory_space<vmem>>, vector<1x8x1xi32>
      %43 = vector.shape_cast %42 : vector<1x8x1xi32> to vector<8x1xi32>
      %44 = vector.shape_cast %41 : vector<8x1xi32> to vector<1x8x1xi32>
      tpu.vector_store %arg5[%c0_26, %c0_27, %c0_28], %44 {strides = array<i32>} : memref<1x8x1xi32, #tpu.memory_space<vmem>>, vector<1x8x1xi32>,
      %c0_29 = arith.constant 0 : index
      %c0_30 = arith.constant 0 : index
      %45 = vector.load %arg7[%c0_29, %c0_30] : memref<8x1xf32, #tpu.memory_space<vmem>>, vector<8x1xf32>
      %c0_31 = arith.constant 0 : index
      %c0_32 = arith.constant 0 : index
      %c0_33 = arith.constant 0 : index
      %46 = vector.load %arg6[%c0_31, %c0_32, %c0_33] : memref<1x8x1xf32, #tpu.memory_space<vmem>>, vector<1x8x1xf32>
      %47 = vector.shape_cast %46 : vector<1x8x1xf32> to vector<8x1xf32>
      %48 = vector.shape_cast %45 : vector<8x1xf32> to vector<1x8x1xf32>
      tpu.vector_store %arg6[%c0_31, %c0_32, %c0_33], %48 {strides = array<i32>} : memref<1x8x1xf32, #tpu.memory_space<vmem>>, vector<1x8x1xf32>,
    } else {
    }
    return
  }
  func.func @transform_0(%arg0: i32, %arg1: i32) -> (i32, i32) {
    %c0_i32 = arith.constant 0 : i32
    %c0_i32_0 = arith.constant 0 : i32
    %c0_i32_1 = arith.constant 0 : i32
    return %c0_i32, %c0_i32_0 : i32, i32
  }
  func.func @transform_1(%arg0: i32, %arg1: i32) -> (i32, i32) {
    %c1_i32 = arith.constant 1 : i32
    %0 = arith.muli %arg0, %c1_i32 : i32
    %1 = arith.addi %0, %arg1 : i32
    %c0_i32 = arith.constant 0 : i32
    %c0_i32_0 = arith.constant 0 : i32
    return %1, %c0_i32 : i32, i32
  }
  func.func @transform_2(%arg0: i32, %arg1: i32) -> (i32, i32) {
    %c1_i32 = arith.constant 1 : i32
    %0 = arith.muli %arg0, %c1_i32 : i32
    %1 = arith.addi %0, %arg1 : i32
    %c0_i32 = arith.constant 0 : i32
    %c0_i32_0 = arith.constant 0 : i32
    return %c0_i32, %1 : i32, i32
  }
  func.func @transform_3(%arg0: i32, %arg1: i32) -> (i32, i32, i32) {
    %c0_i32 = arith.constant 0 : i32
    %c0_i32_0 = arith.constant 0 : i32
    %c0_i32_1 = arith.constant 0 : i32
    return %arg0, %c0_i32, %c0_i32_0 : i32, i32, i32
  }
  func.func @transform_4(%arg0: i32, %arg1: i32) -> (i32, i32, i32) {
    %c0_i32 = arith.constant 0 : i32
    %c0_i32_0 = arith.constant 0 : i32
    %c0_i32_1 = arith.constant 0 : i32
    return %arg0, %c0_i32, %c0_i32_0 : i32, i32, i32
  }
}

</mosaic_0001>

<bundles_post_ra>
// kernel: tpu_custom_call.1
= control target key start
LH: loop header
LB: loop body
LE: loop exit
PB: predicated region body
PF: predicated region fallthrough
CT: control target
= control target key end

     0   :  { %vm111_vm0 = vcmask 261120   ;;  %s1160_s0 = inlined_call_operand.vmem [shape: f32[8,32], index: 0, kind: input, shape index: {}]   ;;  %s1161_s1 = inlined_call_operand.vmem [shape: f32[512,32], index: 1, kind: input, shape index: {}]   ;;  %s1162_s2 = inlined_call_operand.hbm [shape: f32[8,512], index: 2, kind: output, shape index: {0}]   ;;  %s1163_s3 = inlined_call_operand.vmem [shape: s32[1,8,1], index: 3, kind: output, shape index: {1}]   ;;  %s1164_s4 = inlined_call_operand.vmem [shape: f32[1,8,1], index: 4, kind: output, shape index: {2}]  }
   0x1   :  { %v63_v0 = vld [vmem:[%s1161_s1 + $0x80] sm:$0xff]  ;;  %v64_v1 = vld [vmem:[%s1161_s1 + $0x88] sm:$0xff]  ;;  %vm870_vm1 = vmpackc.low %vm111_vm0, %vm111_vm0 }
   0x2   :  { %v95_v2 = vld [vmem:[%s1161_s1 + $0x180] sm:$0xff]  ;;  %v700_v3 = vpack.c.bf16 %v64_v1, %v63_v0  ;;  %v96_v5 = vld [vmem:[%s1161_s1 + $0x188] sm:$0xff]  ;;  %v65_v13 = vld [vmem:[%s1161_s1 + $0x90] sm:$0xff] }
   0x3   :  { %v47_v6 = vld [vmem:[%s1161_s1] sm:$0xff]  ;;  %v748_v7 = vpack.c.bf16 %v96_v5, %v95_v2  ;;  %v48_v8 = vld [vmem:[%s1161_s1 + $0x8] sm:$0xff]  ;;  %v66_v14 = vld [vmem:[%s1161_s1 + $0x98] sm:$0xff] }
   0x4   :  { %v79_v9 = vld [vmem:[%s1161_s1 + $0x100] sm:$0xff]  ;;  %v80_v10 = vld [vmem:[%s1161_s1 + $0x108] sm:$0xff]  ;;  %702 = vmatprep.subr.msk.bf16.mxu0 %vm870_vm1, %v700_v3  ;;  %v703_v11 = vpack.c.bf16 %v48_v8, %v47_v6  ;;  %v97_v15 = vld [vmem:[%s1161_s1 + $0x190] sm:$0xff]  ;;  %v706_v16 = vpack.c.bf16 %v66_v14, %v65_v13 }
   0x5   :  { %v751_v12 = vpack.c.bf16 %v80_v10, %v79_v9  ;;  %750 = vmatprep.subr.msk.bf16.mxu1 %vm870_vm1, %v748_v7  ;;  %v98_v17 = vld [vmem:[%s1161_s1 + $0x198] sm:$0xff]  ;;  %v49_v19 = vld [vmem:[%s1161_s1 + $0x10] sm:$0xff]  ;;  %v67_v23 = vld [vmem:[%s1161_s1 + $0xa0] sm:$0xff] }
   0x6   :  { %705 = vmatpush3.bf16.xpose.msk.msra.mxu0 %vm870_vm1, %v703_v11  ;;  %v754_v18 = vpack.c.bf16 %v98_v17, %v97_v15  ;;  %v50_v20 = vld [vmem:[%s1161_s1 + $0x18] sm:$0xff]  ;;  %v81_v21 = vld [vmem:[%s1161_s1 + $0x110] sm:$0xff]  ;;  %v68_v24 = vld [vmem:[%s1161_s1 + $0xa8] sm:$0xff] }
   0x7   :  { %753 = vmatpush3.bf16.xpose.msk.msra.mxu1 %vm870_vm1, %v751_v12  ;;  %708 = vmatprep.subr.msk.bf16.mxu0 %vm870_vm1, %v706_v16  ;;  %v82_v22 = vld [vmem:[%s1161_s1 + $0x118] sm:$0xff]  ;;  %v99_v25 = vld [vmem:[%s1161_s1 + $0x1a0] sm:$0xff]  ;;  %v100_v26 = vld [vmem:[%s1161_s1 + $0x1a8] sm:$0xff]  ;;  %v709_v27 = vpack.c.bf16 %v50_v20, %v49_v19  ;;  %v712_v29 = vpack.c.bf16 %v68_v24, %v67_v23 }
   0x8   :  { %756 = vmatprep.subr.msk.bf16.mxu1 %vm870_vm1, %v754_v18  ;;  %v757_v28 = vpack.c.bf16 %v82_v22, %v81_v21  ;;  %v760_v30 = vpack.c.bf16 %v100_v26, %v99_v25  ;;  %v51_v31 = vld [vmem:[%s1161_s1 + $0x20] sm:$0xff]  ;;  %v52_v32 = vld [vmem:[%s1161_s1 + $0x28] sm:$0xff]  ;;  %v69_v35 = vld [vmem:[%s1161_s1 + $0xb0] sm:$0xff] }
   0x9   :  { %v83_v33 = vld [vmem:[%s1161_s1 + $0x120] sm:$0xff]  ;;  %v84_v34 = vld [vmem:[%s1161_s1 + $0x128] sm:$0xff]  ;;  %v70_v36 = vld [vmem:[%s1161_s1 + $0xb8] sm:$0xff]  ;;  %v715_v39 = vpack.c.bf16 %v52_v32, %v51_v31 }
   0xa   :  { %v101_v37 = vld [vmem:[%s1161_s1 + $0x1b0] sm:$0xff]  ;;  %v102_v38 = vld [vmem:[%s1161_s1 + $0x1b8] sm:$0xff]  ;;  %v763_v40 = vpack.c.bf16 %v84_v34, %v83_v33  ;;  %v718_v41 = vpack.c.bf16 %v70_v36, %v69_v35  ;;  %v985_v46 = vld [vmem:[%s1160_s0] sm:$0xff] }
   0xb   :  { %v766_v42 = vpack.c.bf16 %v102_v38, %v101_v37  ;;  %v53_v43 = vld [vmem:[%s1161_s1 + $0x30] sm:$0xff]  ;;  %v54_v44 = vld [vmem:[%s1161_s1 + $0x38] sm:$0xff]  ;;  %v71_v48 = vld [vmem:[%s1161_s1 + $0xc0] sm:$0xff] }
   0xc   :  { %v85_v45 = vld [vmem:[%s1161_s1 + $0x130] sm:$0xff]  ;;  %v86_v47 = vld [vmem:[%s1161_s1 + $0x138] sm:$0xff] }
   0xe   :  { %711 = vmatpush3.bf16.xpose.msk.msra.mxu0 %vm870_vm1, %v709_v27 }
   0xf   :  { %759 = vmatpush3.bf16.xpose.msk.msra.mxu1 %vm870_vm1, %v757_v28  ;;  %714 = vmatprep.subr.msk.bf16.mxu0 %vm870_vm1, %v712_v29 }
  0x10   :  { %762 = vmatprep.subr.msk.bf16.mxu1 %vm870_vm1, %v760_v30 }
  0x16   :  { %717 = vmatpush3.bf16.xpose.msk.msra.mxu0 %vm870_vm1, %v715_v39 }
  0x17   :  { %765 = vmatpush3.bf16.xpose.msk.msra.mxu1 %vm870_vm1, %v763_v40  ;;  %720 = vmatprep.subr.msk.bf16.mxu0 %vm870_vm1, %v718_v41 }
  0x18   :  { %768 = vmatprep.subr.msk.bf16.mxu1 %vm870_vm1, %v766_v42 }
  0x19   :  { %10 = vsyncpa [#allocation5], 0  ;;  %v72_v49 = vld [vmem:[%s1161_s1 + $0xc8] sm:$0xff]  ;;  %v103_v50 = vld [vmem:[%s1161_s1 + $0x1c0] sm:$0xff]  ;;  %664 = vmatprep.mubr.msk.f32.mxu0 %vm111_vm0, %v985_v46  ;;  %698 = vmatprep.mubr.msk.f32.mxu1 %vm111_vm0, %v985_v46  ;;  %v721_v52 = vpack.c.bf16 %v54_v44, %v53_v43  ;;  %v769_v53 = vpack.c.bf16 %v86_v47, %v85_v45  ;;  %vm43_vm2 = vcmask 7168   ;;  %s833_s13 = smov [#allocation4]  }
  0x1a   :  { %v104_v51 = vld [vmem:[%s1161_s1 + $0x1c8] sm:$0xff]  ;;  %v724_v54 = vpack.c.bf16 %v72_v49, %v71_v48  ;;  %v55_v56 = vld [vmem:[%s1161_s1 + $0x40] sm:$0xff]  ;;  %v73_v60 = vld [vmem:[%s1161_s1 + $0xd0] sm:$0xff]  ;;  %s544_s14 = sshll.u32 %s833_s13, 4  ;;  %s545_s14 = int_to_ptr.vmem [resolvable:$true] %s544_s14 }
  0x1b   :  { %v772_v55 = vpack.c.bf16 %v104_v51, %v103_v50  ;;  %v56_v57 = vld [vmem:[%s1161_s1 + $0x48] sm:$0xff]  ;;  %v87_v58 = vld [vmem:[%s1161_s1 + $0x140] sm:$0xff]  ;;  %v74_v61 = vld [vmem:[%s1161_s1 + $0xd8] sm:$0xff]  ;;  %s807_s15 = scalar_lea.vmem %s545_s14, 512  ;;  %p812_p1 = scmp.lt.s32.totalorder %s545_s14, %s545_s14 }
  0x1c   :  { %v88_v59 = vld [vmem:[%s1161_s1 + $0x148] sm:$0xff]  ;;  %v105_v62 = vld [vmem:[%s1161_s1 + $0x1d0] sm:$0xff]  ;;  %v106_v63 = vld [vmem:[%s1161_s1 + $0x1d8] sm:$0xff]  ;;  %v727_v0 = vpack.c.bf16 %v56_v57, %v55_v56  ;;  %v730_v2 = vpack.c.bf16 %v74_v61, %v73_v60  ;;  %p808_p0 = scmp.ne.s32.totalorder %s545_s14, %s807_s15  ;;  %p813_p2 = scmp.lt.s32.totalorder %s807_s15, %s807_s15 }
  0x1d   :  { %v775_v1 = vpack.c.bf16 %v88_v59, %v87_v58  ;;  %v778_v3 = vpack.c.bf16 %v106_v63, %v105_v62  ;;  %v57_v5 = vld [vmem:[%s1161_s1 + $0x50] sm:$0xff]  ;;  %v58_v6 = vld [vmem:[%s1161_s1 + $0x58] sm:$0xff]  ;;  %v75_v9 = vld [vmem:[%s1161_s1 + $0xe0] sm:$0xff] }
  0x1e   :  { %723 = vmatpush3.bf16.xpose.msk.msra.mxu0 %vm870_vm1, %v721_v52  ;;  %v89_v7 = vld [vmem:[%s1161_s1 + $0x150] sm:$0xff]  ;;  %v90_v8 = vld [vmem:[%s1161_s1 + $0x158] sm:$0xff]  ;;  %v76_v10 = vld [vmem:[%s1161_s1 + $0xe8] sm:$0xff]  ;;  %v733_v13 = vpack.c.bf16 %v58_v6, %v57_v5  ;;  %p814_p3 = por %p813_p2, %p812_p1 }
  0x1f   :  { %771 = vmatpush3.bf16.xpose.msk.msra.mxu1 %vm870_vm1, %v769_v53  ;;  %726 = vmatprep.subr.msk.bf16.mxu0 %vm870_vm1, %v724_v54  ;;  %v107_v11 = vld [vmem:[%s1161_s1 + $0x1e0] sm:$0xff]  ;;  %v108_v12 = vld [vmem:[%s1161_s1 + $0x1e8] sm:$0xff]  ;;  %v781_v14 = vpack.c.bf16 %v90_v8, %v89_v7  ;;  %v736_v15 = vpack.c.bf16 %v76_v10, %v75_v9  ;;  %v77_v21 = vld [vmem:[%s1161_s1 + $0xf0] sm:$0xff]  ;;  %v831_v53 = vmov -inf   ;;  %v467_v54 = vlaneseq }
  0x20   :  { %774 = vmatprep.subr.msk.bf16.mxu1 %vm870_vm1, %v772_v55  ;;  %v784_v16 = vpack.c.bf16 %v108_v12, %v107_v11  ;;  %v59_v17 = vld [vmem:[%s1161_s1 + $0x60] sm:$0xff]  ;;  %v60_v18 = vld [vmem:[%s1161_s1 + $0x68] sm:$0xff]  ;;  %v78_v22 = vld [vmem:[%s1161_s1 + $0xf8] sm:$0xff]  ;;  %44 = vst.msk [vmem:[#allocation2] sm:$0xff] %vm43_vm2, %v831_v53  ;;  %p815_p4 = pnand %p814_p3, %p808_p0 }
  0x21   :  { %v91_v19 = vld [vmem:[%s1161_s1 + $0x160] sm:$0xff]  ;;  %v92_v20 = vld [vmem:[%s1161_s1 + $0x168] sm:$0xff]  ;;  %v109_v23 = vld [vmem:[%s1161_s1 + $0x1f0] sm:$0xff]  ;;  %v739_v25 = vpack.c.bf16 %v60_v18, %v59_v17  ;;  %v742_v27 = vpack.c.bf16 %v78_v22, %v77_v21  ;;  %v468_v55 = vand.u32 127, %v467_v54 }
  0x22   :  { %v110_v24 = vld [vmem:[%s1161_s1 + $0x1f8] sm:$0xff]  ;;  %v787_v26 = vpack.c.bf16 %v92_v20, %v91_v19  ;;  %v61_v29 = vld [vmem:[%s1161_s1 + $0x70] sm:$0xff] }
  0x23   :  { %v790_v28 = vpack.c.bf16 %v110_v24, %v109_v23  ;;  %v62_v30 = vld [vmem:[%s1161_s1 + $0x78] sm:$0xff]  ;;  %v93_v31 = vld [vmem:[%s1161_s1 + $0x170] sm:$0xff]  ;;  %v469_v56 = vadd.s32 128, %v468_v55  ;;  %v470_v57 = vadd.s32 256, %v468_v55  ;;  %v471_v58 = vadd.s32 384, %v468_v55 }
  0x24   :  { %v94_v32 = vld [vmem:[%s1161_s1 + $0x178] sm:$0xff]  ;;  %v745_v33 = vpack.c.bf16 %v62_v30, %v61_v29 }
  0x25   :  { %v793_v34 = vpack.c.bf16 %v94_v32, %v93_v31 }
  0x26   :  { %729 = vmatpush3.bf16.xpose.msk.msra.mxu0 %vm870_vm1, %v727_v0 }
  0x27   :  { %777 = vmatpush3.bf16.xpose.msk.msra.mxu1 %vm870_vm1, %v775_v1  ;;  %732 = vmatprep.subr.msk.bf16.mxu0 %vm870_vm1, %v730_v2  ;;  %v518_v59 = vld [vmem:[#allocation2] sm:$0xff] }
  0x28   :  { %780 = vmatprep.subr.msk.bf16.mxu1 %vm870_vm1, %v778_v3 }
  0x2e   :  { %735 = vmatpush3.bf16.xpose.msk.msra.mxu0 %vm870_vm1, %v733_v13  ;;  %v832_v13 = vmov 0  }
  0x2f   :  { %783 = vmatpush3.bf16.xpose.msk.msra.mxu1 %vm870_vm1, %v781_v14  ;;  %738 = vmatprep.subr.msk.bf16.mxu0 %vm870_vm1, %v736_v15  ;;  %45 = vst.msk [vmem:[#allocation3] sm:$0xff] %vm43_vm2, %v832_v13 }
  0x30   :  { %786 = vmatprep.subr.msk.bf16.mxu1 %vm870_vm1, %v784_v16 }
  0x36   :  { %741 = vmatpush3.bf16.xpose.msk.msra.mxu0 %vm870_vm1, %v739_v25 }
  0x37   :  { %789 = vmatpush3.bf16.xpose.msk.msra.mxu1 %vm870_vm1, %v787_v26  ;;  %744 = vmatprep.subr.msk.bf16.mxu0 %vm870_vm1, %v742_v27 }
  0x38   :  { %792 = vmatprep.subr.msk.bf16.mxu1 %vm870_vm1, %v790_v28 }
  0x3e   :  { %747 = vmatpush3.bf16.xpose.msk.msra.mxu0 %vm870_vm1, %v745_v33 }
  0x3f   :  { %795 = vmatpush3.bf16.xpose.msk.msra.mxu1 %vm870_vm1, %v793_v34 }
  0x45   :  { %665 = vmatmul.mubr.msk.f32.vlgmr.msra.gmra.mrb[0].mxu0 %vm111_vm0, %v985_v46 }
  0x46   :  { %699 = vmatmul.mubr.msk.f32.vlgmr.msra.gmra.mrb[0].mxu1 %vm111_vm0, %v985_v46 }
 0x118   :  { %v373_v35 = vpop.f32.mrb[0].mxu0 }
 0x119   :  { %v444_v36 = vpop.f32.mrb[0].mxu1  ;;  %v449_v37 = vmul.f32 0.033333335, %v373_v35  ;;  %v375_v39 = vpop.f32.mrb[1].mxu0 }
 0x11a   :  { %v451_v38 = vmul.f32 0.033333335, %v444_v36  ;;  %v446_v40 = vpop.f32.mrb[1].mxu1  ;;  %v450_v41 = vmul.f32 0.033333335, %v375_v39 }
 0x11b   :  { %v452_v42 = vmul.f32 0.033333335, %v446_v40  ;;  %799 = vtanh.f32 %v449_v37 }
 0x11c   :  { %801 = vtanh.f32 %v451_v38 }
 0x11d   :  { %803 = vtanh.f32 %v450_v41 }
 0x11e   :  { %805 = vtanh.f32 %v452_v42 }
 0x125   :  { %v800_v4 = vpop.eup %799 }
 0x126   :  { %v802_v43 = vpop.eup %801  ;;  %v457_v44 = vmul.f32 30.0, %v800_v4 }
 0x127   :  { %v804_v45 = vpop.eup %803  ;;  %v459_v47 = vmul.f32 30.0, %v802_v43 }
 0x128   :  { %v806_v48 = vpop.eup %805  ;;  %461 = vst [vmem:[#allocation4] sm:$0xff] %v457_v44  ;;  %v458_v46 = vmul.f32 30.0, %v804_v45 }
 0x129   :  { %463 = vst [vmem:[#allocation4 + $0x10] sm:$0xff] %v459_v47  ;;  %v460_v49 = vmul.f32 30.0, %v806_v48 }
 0x12a   :  { %462 = vst [vmem:[#allocation4 + $0x8] sm:$0xff] %v458_v46  ;;  %v485_v50 = vmax.f32 %v457_v44, %v458_v46 }
 0x12b   :  { %464 = vst [vmem:[#allocation4 + $0x18] sm:$0xff] %v460_v49  ;;  %v486_v51 = vmax.f32 %v459_v47, %v460_v49 }
 0x12d   :  { %v487_v52 = vmax.f32 %v485_v50, %v486_v51 }
 0x12f   :  { %488 = vmax.xlane.f32.xlu0 %v487_v52 }
 0x1bc   :  { %v489_v60 = vpop.xlane.xlu0 %488 }
 0x1bd   :  { %vm490_vm3 = vcmp.eq.f32.partialorder %v457_v44, %v489_v60  ;;  %vm491_vm4 = vcmp.eq.f32.partialorder %v458_v46, %v489_v60  ;;  %vm492_vm5 = vcmp.eq.f32.partialorder %v459_v47, %v489_v60  ;;  %vm493_vm6 = vcmp.eq.f32.partialorder %v460_v49, %v489_v60 }
 0x1be   :  { %v494_v61 = vsel %vm490_vm3, %v468_v55, 2147483647  ;;  %v495_v62 = vsel %vm491_vm4, %v469_v56, 2147483647  ;;  %v496_v63 = vsel %vm492_vm5, %v470_v57, 2147483647  ;;  %vm519_vm7 = vcmp.gt.f32.partialorder %v489_v60, %v518_v59 }
 0x1bf   :  { %v497_v0 = vsel %vm493_vm6, %v471_v58, 2147483647  ;;  %vm498_vm8 = vcmp.lt.s32.totalorder %v494_v61, %v495_v62  ;;  %v525_v1 = vsel %vm519_vm7, %v489_v60, %v518_v59 }
 0x1c0   :  { %v499_v2 = vsel %vm498_vm8, %v494_v61, %v495_v62  ;;  %vm500_vm9 = vcmp.lt.s32.totalorder %v496_v63, %v497_v0  ;;  %526 = vst.msk [vmem:[#allocation2] sm:$0xff] %vm43_vm2, %v525_v1 }
 0x1c1   :  { %v501_v3 = vsel %vm500_vm9, %v496_v63, %v497_v0 }
 0x1c2   :  { %vm502_vm10 = vcmp.lt.s32.totalorder %v499_v2, %v501_v3 }
 0x1c3   :  { %v503_v5 = vsel %vm502_vm10, %v499_v2, %v501_v3 }
 0x1c4   :  { %v505_v6 = vshra.s32 %v503_v5, 16  ;;  %v504_v9 = vand.u32 65535, %v503_v5 }
 0x1c6   :  { %v507_v7 = vcvt.s32.f32 %v505_v6  ;;  %v506_v11 = vcvt.s32.f32 %v504_v9 }
 0x1c7   :  { %v532_v8 = vld [vmem:[#allocation2] sm:$0xff] }
 0x1c8   :  { %508 = vmin.xlane.f32.xlu0 %v507_v7  ;;  %533 = vst.msk [vmem:[%s1164_s4] sm:$0xff] %vm43_vm2, %v532_v8 }
 0x255   :  { %v509_v10 = vpop.xlane.xlu0 %508 }
 0x256   :  { %vm510_vm11 = vcmp.eq.f32.partialorder %v507_v7, %v509_v10 }
 0x257   :  { %v511_v12 = vsel %vm510_vm11, %v506_v11, inf }
 0x258   :  { %512 = vmin.xlane.f32.xlu1 %v511_v12 }
 0x259   :  { %818 = shalt.err (!%p815_p4)
}
 0x25a   :  { %s819_s17 = scalar_lea.hbm %s1162_s2, 512 }
 0x25b   :  { %p820_p5 = scmp.ne.s32.totalorder %s1162_s2, %s819_s17  ;;  %p823_p6 = scmp.lt.u32.totalorder %s819_s17, %s1162_s2 }
 0x25d   :  { %p825_p7 = pnand %p823_p6, %p820_p5 }
 0x25f   :  { %828 = shalt.err (!%p825_p7)
}
 0x260   :  { %547 = dma.vmem_to_hbm [thread:$0]  %s545_s14, 512, %s1162_s2, [#allocation5]   ;;  %v515_v14 = vcvt.f32.s32 %v509_v10  ;;  %v520_v18 = vld [vmem:[#allocation3] sm:$0xff] }
 0x262   :  { %v516_v16 = vshll.u32 %v515_v14, 16 }
 0x2e5   :  { %v513_v15 = vpop.xlane.xlu1 %512 }
 0x2e6   :  { %v514_v17 = vcvt.f32.s32 %v513_v15 }
 0x2e8   :  { %v517_v19 = vadd.s32 %v516_v16, %v514_v17 }
 0x2ea   :  { %v521_v20 = vsel %vm519_vm7, %v517_v19, %v520_v18 }
 0x2eb   :  { %523 = vst.msk [vmem:[#allocation3] sm:$0xff] %vm43_vm2, %v521_v20 }
 0x2f2   :  { %v530_v21 = vld [vmem:[#allocation3] sm:$0xff] }
 0x2f3   :  { %531 = vst.msk [vmem:[%s1163_s3] sm:$0xff] %vm43_vm2, %v530_v21 }
 0x2f4   :  { %829 = dma.done.wait [#allocation5], 512  }
 0x2f5   :  { %830 = vsyncadd [#allocation5], 4294966784 }
 0x2f6   :  { %559 = vsyncpa [#allocation5], 1 }

</bundles_post_ra>
